<compile_context>
chip_gen: v5e
topology: v5e:2x2
jax: 0.10.0
libtpu: 0.0.40
codegen_flags: <defaults>
</compile_context>

<pallas_src>
import functools

import jax
import jax.numpy as jnp
from jax.experimental import pallas as pl
from jax.experimental.pallas import tpu as pltpu


def _tnn_bin_conv_kernel(x_ref, w_ref, mask_ref, scale_ref, bias_ref, o_ref,
                         xflat_ref, patches_ref, *, kh, kw, pad, w, lp):
    # x_ref:       (bt, Cin, H*W)        bf16, already sign()-ed (+-1 / 0)
    # w_ref:       (CP, KH*KW*Cin)       bf16 transposed im2col weight matrix
    # mask_ref:    (KH*KW, H*W)          bf16 {0,1} per-tap column validity mask
    # scale_ref:   (CP, 1)               f32 fused BN scale  (zero on pad rows)
    # bias_ref:    (CP, 1)               f32 fused conv-bias + BN shift
    # o_ref:       (bt, CP, H*W)         output (f32 or bf16)
    # xflat_ref:   (bt, Cin, lp+H*W+lp)  bf16 scratch, zero halo on both sides
    # patches_ref: (KH*KW*Cin, H*W)      bf16 scratch, transposed im2col matrix
    bt, cin, hw = x_ref.shape

    # Halo-only zeroing: the interior is fully overwritten every step, so only
    # the two lp-wide halo strips need zeros.  Re-done every step because the
    # batch grid axis is "parallel" (megacore) and cannot be gated on
    # program_id == 0.  Both strips start at 128-multiples -> unmasked stores.
    halo = jnp.zeros((bt, cin, lp), dtype=xflat_ref.dtype)
    xflat_ref[:, :, 0:lp] = halo
    xflat_ref[:, :, lp + hw:] = halo
    # Interior write at lane offset lp (multiple of 128) -> aligned, unmasked.
    xflat_ref[:, :, lp:lp + hw] = x_ref[...]

    wt = w_ref[...]                       # (CP, K)
    scale = scale_ref[...]                # (CP, 1)
    bias = bias_ref[...]                  # (CP, 1)

    for b in range(bt):                   # static unroll; bt is small
        # Transposed im2col: rows t*cin:(t+1)*cin of patches^T hold the
        # (dy,dx)-shifted image flattened over H*W on the lane axis, so every
        # assembly store is H*W lanes wide.  Out-of-bounds rows read the zero
        # halo; out-of-bounds columns are zeroed by the {0,1} mask (exact in
        # bf16 since all values are +-1/0).
        for dy in range(kh):
            for dx in range(kw):
                t = dy * kw + dx
                d = (dy - pad) * w + (dx - pad)
                shifted = xflat_ref[b, :, lp + d:lp + d + hw]      # (Cin, H*W)
                patches_ref[t * cin:(t + 1) * cin, :] = (
                    shifted * mask_ref[t:t + 1, :])
        # Single MXU matmul per image: (CP, K) x (K, H*W) -> (CP, H*W) f32.
        # H*W rides the MXU N / lane dimension (256-wide on v6e/v7x).
        acc = jnp.dot(wt, patches_ref[...], preferred_element_type=jnp.float32)
        # Fused conv-bias + BatchNorm affine, per output channel (sublane dim).
        o_ref[b] = (acc * scale + bias).astype(o_ref.dtype)


def _pick_batch_tile(n, cin, hw):
    """Images per grid step.  Amortizes the per-step fixed cost while keeping
    >= 2 parallel grid steps so both v7x TensorCores are used (v5e/v6e: 1 TC)."""
    if n <= 1:
        return 1
    best = 1
    for bt in range(1, n // 2 + 1):
        if n % bt == 0 and bt * cin * hw * 2 <= (1 << 20):   # <= 1 MiB in / step
            best = bt
    return best


def _vmem_limit_bytes(per_step_bytes, scratch_bytes):
    """Compute the VMEM limit from actual block + scratch sizes and clamp to a
    fraction of this chip's physical VMEM (64 MiB on v7x, 128 MiB on v5e/v6e)."""
    need = 2 * per_step_bytes + scratch_bytes           # blocks double-buffered
    need = int(need * 1.5) + (2 << 20)                  # compiler-temp headroom
    try:
        cap = getattr(pltpu.get_tpu_info(), "vmem_capacity_bytes", 0) or (64 << 20)
    except Exception:
        cap = 64 << 20
    return int(min(max(need, 8 << 20), int(cap * 0.7)))


@functools.partial(jax.jit, static_argnames=("padding", "out_dtype"))
def tnn_bin_conv2d(x_nchw, weight, conv_bias, gamma, beta, run_mean, run_var,
                   padding=1, eps=1e-5, out_dtype=jnp.float32):
    """Pallas implementation of Tnn_Bin_Conv2d.forward (A=2, activation_nor=1)."""
    n, cin, h, w = x_nchw.shape
    cout, cin_w, kh, kw = weight.shape
    assert cin_w == cin, "grouped convolution not supported"       # TODO(synk)
    assert kh == 2 * padding + 1 and kw == 2 * padding + 1, (
        "only 'same' convs (stride 1, k = 2*pad + 1) are implemented")

    hw = h * w
    kdim = kh * kw * cin
    # Output channels ride the sublane axis -> pad to a multiple of 8 only
    # (the previous version padded to 128 lanes, 16x HBM writeback at Cout=8).
    cp = ((cout + 7) // 8) * 8
    bt = _pick_batch_tile(n, cin, hw)
    lp = ((padding * w + padding + 127) // 128) * 128   # lane-aligned halo width

    # ---- glue (plain JAX) ----
    # BinActive sign() fused with the bf16 cast; +-1/0 are exact in bf16.  The
    # kernel-native layout is (N, C, H*W) == flattened NCHW, so no transpose /
    # layout HBM pass is needed on either side.
    x_flat = jnp.sign(x_nchw).astype(jnp.bfloat16).reshape(n, cin, hw)

    # PyTorch conv weight (Cout, Cin, KH, KW) -> transposed im2col (CP, K).
    w_mat = jnp.transpose(weight, (0, 2, 3, 1)).reshape(cout, kdim)
    w_mat = jnp.pad(w_mat, ((0, cp - cout), (0, 0))).astype(jnp.bfloat16)

    # {0,1} column-validity mask per tap (zero padding in the W direction;
    # zero padding in the H direction is handled by the kernel's zero halo).
    col = jnp.arange(hw, dtype=jnp.int32) % w
    mask_rows = []
    for dy in range(kh):
        for dx in range(kw):
            rx = dx - padding
            mask_rows.append((col + rx >= 0) & (col + rx < w))
    mask = jnp.stack(mask_rows, axis=0).astype(jnp.bfloat16)       # (KH*KW, H*W)

    # Fold conv bias + inference-mode BatchNorm into per-channel scale/shift.
    bn_scale = gamma / jnp.sqrt(run_var + eps)
    bn_shift = beta - bn_scale * run_mean
    eff_scale = jnp.pad(bn_scale, (0, cp - cout)).reshape(cp, 1).astype(jnp.float32)
    eff_bias = jnp.pad(bn_scale * conv_bias + bn_shift,
                       (0, cp - cout)).reshape(cp, 1).astype(jnp.float32)

    kernel = functools.partial(_tnn_bin_conv_kernel,
                               kh=kh, kw=kw, pad=padding, w=w, lp=lp)

    out_isize = jnp.dtype(out_dtype).itemsize
    per_step_bytes = (bt * cin * hw * 2 + cp * kdim * 2 + kh * kw * hw * 2
                      + 2 * cp * 4 + bt * cp * hw * out_isize)
    scratch_bytes = bt * cin * (2 * lp + hw) * 2 + kdim * hw * 2

    out = pl.pallas_call(
        kernel,
        out_shape=jax.ShapeDtypeStruct((n, cp, hw), out_dtype),
        grid_spec=pltpu.PrefetchScalarGridSpec(
            num_scalar_prefetch=0,
            grid=(n // bt,),
            in_specs=[
                pl.BlockSpec((bt, cin, hw), lambda i: (i, 0, 0)),
                # Constant operands (weight / mask / scale / bias): < 8 KiB at
                # these sizes, so plain double-buffered specs are fine here.
                pl.BlockSpec((cp, kdim), lambda i: (0, 0)),
                pl.BlockSpec((kh * kw, hw), lambda i: (0, 0)),
                pl.BlockSpec((cp, 1), lambda i: (0, 0)),
                pl.BlockSpec((cp, 1), lambda i: (0, 0)),
            ],
            out_specs=pl.BlockSpec((bt, cp, hw), lambda i: (i, 0, 0)),
            scratch_shapes=[
                pltpu.VMEM((bt, cin, 2 * lp + hw), jnp.bfloat16),
                pltpu.VMEM((kdim, hw), jnp.bfloat16),
            ],
        ),
        compiler_params=pltpu.CompilerParams(
            dimension_semantics=("parallel",),
            vmem_limit_bytes=_vmem_limit_bytes(per_step_bytes, scratch_bytes),
        ),
    )(x_flat, w_mat, mask, eff_scale, eff_bias)

    # Drop sublane padding (no-op when Cout % 8 == 0); layout is already NCHW.
    return out[:, :cout, :].reshape(n, cout, h, w)


def _reference(x_nchw, weight, conv_bias, gamma, beta, run_mean, run_var,
               padding=1, eps=1e-5):
    """Pure-JAX reference of the same forward, for a correctness sanity check."""
    xb = jnp.sign(x_nchw)
    y = jax.lax.conv_general_dilated(
        xb, weight, window_strides=(1, 1),
        padding=[(padding, padding), (padding, padding)],
        dimension_numbers=("NCHW", "OIHW", "NCHW"))
    y = y + conv_bias[None, :, None, None]
    scale = gamma / jnp.sqrt(run_var + eps)
    shift = beta - scale * run_mean
    return y * scale[None, :, None, None] + shift[None, :, None, None]


if __name__ == "__main__":
    key = jax.random.PRNGKey(0)
    k_x, k_w, k_b, k_g, k_be, k_rm, k_rv = jax.random.split(key, 7)

    N, CIN, COUT, H, W, K = 2, 4, 8, 16, 16, 3

    x = jax.random.normal(k_x, (N, CIN, H, W), jnp.float32)
    weight = jax.random.normal(k_w, (COUT, CIN, K, K), jnp.float32) * 0.1
    conv_bias = jax.random.normal(k_b, (COUT,), jnp.float32) * 0.1
    gamma = 1.0 + 0.1 * jax.random.normal(k_g, (COUT,), jnp.float32)
    beta = 0.1 * jax.random.normal(k_be, (COUT,), jnp.float32)
    run_mean = 0.1 * jax.random.normal(k_rm, (COUT,), jnp.float32)
    run_var = jnp.abs(1.0 + 0.1 * jax.random.normal(k_rv, (COUT,), jnp.float32))

    out = tnn_bin_conv2d(x, weight, conv_bias, gamma, beta, run_mean, run_var)
    out = jax.block_until_ready(out)
    assert out.shape == (N, COUT, H, W)

    # Strict check against a reference using the same bf16 weight quantization
    # (isolates kernel correctness from the intentional bf16 weight cast).
    w_q = weight.astype(jnp.bfloat16).astype(jnp.float32)
    ref_q = _reference(x, w_q, conv_bias, gamma, beta, run_mean, run_var)
    assert jnp.allclose(out, ref_q, atol=1e-3, rtol=1e-3), "mismatch vs bf16-weight reference"

    # Loose check against the full f32 reference (bounds the bf16 weight error).
    ref_f = _reference(x, weight, conv_bias, gamma, beta, run_mean, run_var)
    assert jnp.allclose(out, ref_f, atol=2e-2, rtol=2e-2), "mismatch vs f32 reference"

    print("KERNEL_OK")
</pallas_src>

<mosaic_0001>
module attributes {stable_mosaic.version = 11 : i64} {
  func.func @_tnn_bin_conv_kernel(%arg0: i32, %arg1: memref<1x4x256xbf16, #tpu.memory_space<vmem>>, %arg2: memref<8x36xbf16, #tpu.memory_space<vmem>>, %arg3: memref<9x256xbf16, #tpu.memory_space<vmem>>, %arg4: memref<8x1xf32, #tpu.memory_space<vmem>>, %arg5: memref<8x1xf32, #tpu.memory_space<vmem>>, %arg6: memref<1x8x256xf32, #tpu.memory_space<vmem>>, %arg7: memref<1x4x512xbf16, #tpu.memory_space<vmem>>, %arg8: memref<36x256xbf16, #tpu.memory_space<vmem>>) attributes {dimension_semantics = [#tpu.dimension_semantics<parallel>], iteration_bounds = array<i64: 2>, scalar_prefetch = 0 : i64, scratch_operands = 2 : i64, tpu.core_type = #tpu.core_type<tc>, window_params = [{transform_indices = @transform_0, window_bounds = array<i64: 1, 4, 256>}, {pipeline_mode = #tpu.pipeline_mode<synchronous>, transform_indices = @transform_1, window_bounds = array<i64: 8, 36>}, {pipeline_mode = #tpu.pipeline_mode<synchronous>, transform_indices = @transform_2, window_bounds = array<i64: 9, 256>}, {pipeline_mode = #tpu.pipeline_mode<synchronous>, transform_indices = @transform_3, window_bounds = array<i64: 8, 1>}, {pipeline_mode = #tpu.pipeline_mode<synchronous>, transform_indices = @transform_4, window_bounds = array<i64: 8, 1>}, {transform_indices = @transform_5, window_bounds = array<i64: 1, 8, 256>}]} {
    %cst = arith.constant 0.000000e+00 : bf16
    %0 = vector.broadcast %cst : bf16 to vector<1x4x128xbf16>
    %c0 = arith.constant 0 : index
    %c0_0 = arith.constant 0 : index
    %c0_1 = arith.constant 0 : index
    %1 = vector.load %arg7[%c0, %c0_0, %c0_1] : memref<1x4x512xbf16, #tpu.memory_space<vmem>>, vector<1x4x128xbf16>
    tpu.vector_store %arg7[%c0, %c0_0, %c0_1], %0 {strides = array<i32>} : memref<1x4x512xbf16, #tpu.memory_space<vmem>>, vector<1x4x128xbf16>,
    %c0_2 = arith.constant 0 : index
    %c0_3 = arith.constant 0 : index
    %c384 = arith.constant 384 : index
    %2 = vector.load %arg7[%c0_2, %c0_3, %c384] : memref<1x4x512xbf16, #tpu.memory_space<vmem>>, vector<1x4x128xbf16>
    tpu.vector_store %arg7[%c0_2, %c0_3, %c384], %0 {strides = array<i32>} : memref<1x4x512xbf16, #tpu.memory_space<vmem>>, vector<1x4x128xbf16>,
    %c0_4 = arith.constant 0 : index
    %c0_5 = arith.constant 0 : index
    %c0_6 = arith.constant 0 : index
    %3 = vector.load %arg1[%c0_4, %c0_5, %c0_6] : memref<1x4x256xbf16, #tpu.memory_space<vmem>>, vector<1x4x256xbf16>
    %c0_7 = arith.constant 0 : index
    %c0_8 = arith.constant 0 : index
    %c128 = arith.constant 128 : index
    %4 = vector.load %arg7[%c0_7, %c0_8, %c128] : memref<1x4x512xbf16, #tpu.memory_space<vmem>>, vector<1x4x256xbf16>
    tpu.vector_store %arg7[%c0_7, %c0_8, %c128], %3 {strides = array<i32>} : memref<1x4x512xbf16, #tpu.memory_space<vmem>>, vector<1x4x256xbf16>,
    %c0_9 = arith.constant 0 : index
    %c0_10 = arith.constant 0 : index
    %5 = vector.load %arg2[%c0_9, %c0_10] : memref<8x36xbf16, #tpu.memory_space<vmem>>, vector<8x36xbf16>
    %c0_11 = arith.constant 0 : index
    %c0_12 = arith.constant 0 : index
    %6 = vector.load %arg4[%c0_11, %c0_12] : memref<8x1xf32, #tpu.memory_space<vmem>>, vector<8x1xf32>
    %c0_13 = arith.constant 0 : index
    %c0_14 = arith.constant 0 : index
    %7 = vector.load %arg5[%c0_13, %c0_14] : memref<8x1xf32, #tpu.memory_space<vmem>>, vector<8x1xf32>
    %c0_15 = arith.constant 0 : index
    %c0_16 = arith.constant 0 : index
    %c111 = arith.constant 111 : index
    %8 = vector.load %arg7[%c0_15, %c0_16, %c111] : memref<1x4x512xbf16, #tpu.memory_space<vmem>>, vector<1x4x256xbf16>
    %9 = vector.shape_cast %8 : vector<1x4x256xbf16> to vector<4x256xbf16>
    %c0_17 = arith.constant 0 : index
    %c0_18 = arith.constant 0 : index
    %10 = vector.load %arg3[%c0_17, %c0_18] : memref<9x256xbf16, #tpu.memory_space<vmem>>, vector<1x256xbf16>
    %11 = vector.broadcast %10 : vector<1x256xbf16> to vector<4x256xbf16>
    %12 = arith.mulf %9, %11 : vector<4x256xbf16>
    %c0_19 = arith.constant 0 : index
    %c0_20 = arith.constant 0 : index
    %13 = vector.load %arg8[%c0_19, %c0_20] : memref<36x256xbf16, #tpu.memory_space<vmem>>, vector<4x256xbf16>
    tpu.vector_store %arg8[%c0_19, %c0_20], %12 {strides = array<i32>} : memref<36x256xbf16, #tpu.memory_space<vmem>>, vector<4x256xbf16>,
    %c0_21 = arith.constant 0 : index
    %c0_22 = arith.constant 0 : index
    %c112 = arith.constant 112 : index
    %14 = vector.load %arg7[%c0_21, %c0_22, %c112] : memref<1x4x512xbf16, #tpu.memory_space<vmem>>, vector<1x4x256xbf16>
    %15 = vector.shape_cast %14 : vector<1x4x256xbf16> to vector<4x256xbf16>
    %c1 = arith.constant 1 : index
    %c0_23 = arith.constant 0 : index
    %16 = vector.load %arg3[%c1, %c0_23] : memref<9x256xbf16, #tpu.memory_space<vmem>>, vector<1x256xbf16>
    %17 = vector.broadcast %16 : vector<1x256xbf16> to vector<4x256xbf16>
    %18 = arith.mulf %15, %17 : vector<4x256xbf16>
    %c4 = arith.constant 4 : index
    %c0_24 = arith.constant 0 : index
    %19 = vector.load %arg8[%c4, %c0_24] : memref<36x256xbf16, #tpu.memory_space<vmem>>, vector<4x256xbf16>
    tpu.vector_store %arg8[%c4, %c0_24], %18 {strides = array<i32>} : memref<36x256xbf16, #tpu.memory_space<vmem>>, vector<4x256xbf16>,
    %c0_25 = arith.constant 0 : index
    %c0_26 = arith.constant 0 : index
    %c113 = arith.constant 113 : index
    %20 = vector.load %arg7[%c0_25, %c0_26, %c113] : memref<1x4x512xbf16, #tpu.memory_space<vmem>>, vector<1x4x256xbf16>
    %21 = vector.shape_cast %20 : vector<1x4x256xbf16> to vector<4x256xbf16>
    %c2 = arith.constant 2 : index
    %c0_27 = arith.constant 0 : index
    %22 = vector.load %arg3[%c2, %c0_27] : memref<9x256xbf16, #tpu.memory_space<vmem>>, vector<1x256xbf16>
    %23 = vector.broadcast %22 : vector<1x256xbf16> to vector<4x256xbf16>
    %24 = arith.mulf %21, %23 : vector<4x256xbf16>
    %c8 = arith.constant 8 : index
    %c0_28 = arith.constant 0 : index
    %25 = vector.load %arg8[%c8, %c0_28] : memref<36x256xbf16, #tpu.memory_space<vmem>>, vector<4x256xbf16>
    tpu.vector_store %arg8[%c8, %c0_28], %24 {strides = array<i32>} : memref<36x256xbf16, #tpu.memory_space<vmem>>, vector<4x256xbf16>,
    %c0_29 = arith.constant 0 : index
    %c0_30 = arith.constant 0 : index
    %c127 = arith.constant 127 : index
    %26 = vector.load %arg7[%c0_29, %c0_30, %c127] : memref<1x4x512xbf16, #tpu.memory_space<vmem>>, vector<1x4x256xbf16>
    %27 = vector.shape_cast %26 : vector<1x4x256xbf16> to vector<4x256xbf16>
    %c3 = arith.constant 3 : index
    %c0_31 = arith.constant 0 : index
    %28 = vector.load %arg3[%c3, %c0_31] : memref<9x256xbf16, #tpu.memory_space<vmem>>, vector<1x256xbf16>
    %29 = vector.broadcast %28 : vector<1x256xbf16> to vector<4x256xbf16>
    %30 = arith.mulf %27, %29 : vector<4x256xbf16>
    %c12 = arith.constant 12 : index
    %c0_32 = arith.constant 0 : index
    %31 = vector.load %arg8[%c12, %c0_32] : memref<36x256xbf16, #tpu.memory_space<vmem>>, vector<4x256xbf16>
    tpu.vector_store %arg8[%c12, %c0_32], %30 {strides = array<i32>} : memref<36x256xbf16, #tpu.memory_space<vmem>>, vector<4x256xbf16>,
    %c0_33 = arith.constant 0 : index
    %c0_34 = arith.constant 0 : index
    %c128_35 = arith.constant 128 : index
    %32 = vector.load %arg7[%c0_33, %c0_34, %c128_35] : memref<1x4x512xbf16, #tpu.memory_space<vmem>>, vector<1x4x256xbf16>
    %33 = vector.shape_cast %32 : vector<1x4x256xbf16> to vector<4x256xbf16>
    %c4_36 = arith.constant 4 : index
    %c0_37 = arith.constant 0 : index
    %34 = vector.load %arg3[%c4_36, %c0_37] : memref<9x256xbf16, #tpu.memory_space<vmem>>, vector<1x256xbf16>
    %35 = vector.broadcast %34 : vector<1x256xbf16> to vector<4x256xbf16>
    %36 = arith.mulf %33, %35 : vector<4x256xbf16>
    %c16 = arith.constant 16 : index
    %c0_38 = arith.constant 0 : index
    %37 = vector.load %arg8[%c16, %c0_38] : memref<36x256xbf16, #tpu.memory_space<vmem>>, vector<4x256xbf16>
    tpu.vector_store %arg8[%c16, %c0_38], %36 {strides = array<i32>} : memref<36x256xbf16, #tpu.memory_space<vmem>>, vector<4x256xbf16>,
    %c0_39 = arith.constant 0 : index
    %c0_40 = arith.constant 0 : index
    %c129 = arith.constant 129 : index
    %38 = vector.load %arg7[%c0_39, %c0_40, %c129] : memref<1x4x512xbf16, #tpu.memory_space<vmem>>, vector<1x4x256xbf16>
    %39 = vector.shape_cast %38 : vector<1x4x256xbf16> to vector<4x256xbf16>
    %c5 = arith.constant 5 : index
    %c0_41 = arith.constant 0 : index
    %40 = vector.load %arg3[%c5, %c0_41] : memref<9x256xbf16, #tpu.memory_space<vmem>>, vector<1x256xbf16>
    %41 = vector.broadcast %40 : vector<1x256xbf16> to vector<4x256xbf16>
    %42 = arith.mulf %39, %41 : vector<4x256xbf16>
    %c20 = arith.constant 20 : index
    %c0_42 = arith.constant 0 : index
    %43 = vector.load %arg8[%c20, %c0_42] : memref<36x256xbf16, #tpu.memory_space<vmem>>, vector<4x256xbf16>
    tpu.vector_store %arg8[%c20, %c0_42], %42 {strides = array<i32>} : memref<36x256xbf16, #tpu.memory_space<vmem>>, vector<4x256xbf16>,
    %c0_43 = arith.constant 0 : index
    %c0_44 = arith.constant 0 : index
    %c143 = arith.constant 143 : index
    %44 = vector.load %arg7[%c0_43, %c0_44, %c143] : memref<1x4x512xbf16, #tpu.memory_space<vmem>>, vector<1x4x256xbf16>
    %45 = vector.shape_cast %44 : vector<1x4x256xbf16> to vector<4x256xbf16>
    %c6 = arith.constant 6 : index
    %c0_45 = arith.constant 0 : index
    %46 = vector.load %arg3[%c6, %c0_45] : memref<9x256xbf16, #tpu.memory_space<vmem>>, vector<1x256xbf16>
    %47 = vector.broadcast %46 : vector<1x256xbf16> to vector<4x256xbf16>
    %48 = arith.mulf %45, %47 : vector<4x256xbf16>
    %c24 = arith.constant 24 : index
    %c0_46 = arith.constant 0 : index
    %49 = vector.load %arg8[%c24, %c0_46] : memref<36x256xbf16, #tpu.memory_space<vmem>>, vector<4x256xbf16>
    tpu.vector_store %arg8[%c24, %c0_46], %48 {strides = array<i32>} : memref<36x256xbf16, #tpu.memory_space<vmem>>, vector<4x256xbf16>,
    %c0_47 = arith.constant 0 : index
    %c0_48 = arith.constant 0 : index
    %c144 = arith.constant 144 : index
    %50 = vector.load %arg7[%c0_47, %c0_48, %c144] : memref<1x4x512xbf16, #tpu.memory_space<vmem>>, vector<1x4x256xbf16>
    %51 = vector.shape_cast %50 : vector<1x4x256xbf16> to vector<4x256xbf16>
    %c7 = arith.constant 7 : index
    %c0_49 = arith.constant 0 : index
    %52 = vector.load %arg3[%c7, %c0_49] : memref<9x256xbf16, #tpu.memory_space<vmem>>, vector<1x256xbf16>
    %53 = vector.broadcast %52 : vector<1x256xbf16> to vector<4x256xbf16>
    %54 = arith.mulf %51, %53 : vector<4x256xbf16>
    %c28 = arith.constant 28 : index
    %c0_50 = arith.constant 0 : index
    %55 = vector.load %arg8[%c28, %c0_50] : memref<36x256xbf16, #tpu.memory_space<vmem>>, vector<4x256xbf16>
    tpu.vector_store %arg8[%c28, %c0_50], %54 {strides = array<i32>} : memref<36x256xbf16, #tpu.memory_space<vmem>>, vector<4x256xbf16>,
    %c0_51 = arith.constant 0 : index
    %c0_52 = arith.constant 0 : index
    %c145 = arith.constant 145 : index
    %56 = vector.load %arg7[%c0_51, %c0_52, %c145] : memref<1x4x512xbf16, #tpu.memory_space<vmem>>, vector<1x4x256xbf16>
    %57 = vector.shape_cast %56 : vector<1x4x256xbf16> to vector<4x256xbf16>
    %c8_53 = arith.constant 8 : index
    %c0_54 = arith.constant 0 : index
    %58 = vector.load %arg3[%c8_53, %c0_54] : memref<9x256xbf16, #tpu.memory_space<vmem>>, vector<1x256xbf16>
    %59 = vector.broadcast %58 : vector<1x256xbf16> to vector<4x256xbf16>
    %60 = arith.mulf %57, %59 : vector<4x256xbf16>
    %c32 = arith.constant 32 : index
    %c0_55 = arith.constant 0 : index
    %61 = vector.load %arg8[%c32, %c0_55] : memref<36x256xbf16, #tpu.memory_space<vmem>>, vector<4x256xbf16>
    tpu.vector_store %arg8[%c32, %c0_55], %60 {strides = array<i32>} : memref<36x256xbf16, #tpu.memory_space<vmem>>, vector<4x256xbf16>,
    %c0_56 = arith.constant 0 : index
    %c0_57 = arith.constant 0 : index
    %62 = vector.load %arg8[%c0_56, %c0_57] : memref<36x256xbf16, #tpu.memory_space<vmem>>, vector<36x256xbf16>
    %cst_58 = arith.constant dense<0.000000e+00> : vector<8x256xf32>
    %63 = tpu.matmul %5, %62, %cst_58 {dimension_numbers = #tpu.dot_dimension_numbers<[1], [0], [0], [1], [0, 0, 1, 1], [], []>} : vector<8x36xbf16>, vector<36x256xbf16>, vector<8x256xf32> -> vector<8x256xf32>
    %64 = vector.broadcast %6 : vector<8x1xf32> to vector<8x256xf32>
    %65 = arith.mulf %63, %64 : vector<8x256xf32>
    %66 = vector.broadcast %7 : vector<8x1xf32> to vector<8x256xf32>
    %67 = arith.addf %65, %66 : vector<8x256xf32>
    %c0_59 = arith.constant 0 : index
    %c0_60 = arith.constant 0 : index
    %c0_61 = arith.constant 0 : index
    %68 = vector.load %arg6[%c0_59, %c0_60, %c0_61] : memref<1x8x256xf32, #tpu.memory_space<vmem>>, vector<1x8x256xf32>
    %69 = vector.shape_cast %68 : vector<1x8x256xf32> to vector<8x256xf32>
    %70 = vector.shape_cast %67 : vector<8x256xf32> to vector<1x8x256xf32>
    tpu.vector_store %arg6[%c0_59, %c0_60, %c0_61], %70 {strides = array<i32>} : memref<1x8x256xf32, #tpu.memory_space<vmem>>, vector<1x8x256xf32>,
    return
  }
  func.func @transform_0(%arg0: i32) -> (i32, i32, i32) {
    %c0_i32 = arith.constant 0 : i32
    %c0_i32_0 = arith.constant 0 : i32
    %c0_i32_1 = arith.constant 0 : i32
    return %arg0, %c0_i32, %c0_i32_0 : i32, i32, i32
  }
  func.func @transform_1(%arg0: i32) -> (i32, i32) {
    %c0_i32 = arith.constant 0 : i32
    %c0_i32_0 = arith.constant 0 : i32
    %c0_i32_1 = arith.constant 0 : i32
    return %c0_i32, %c0_i32_0 : i32, i32
  }
  func.func @transform_2(%arg0: i32) -> (i32, i32) {
    %c0_i32 = arith.constant 0 : i32
    %c0_i32_0 = arith.constant 0 : i32
    %c0_i32_1 = arith.constant 0 : i32
    return %c0_i32, %c0_i32_0 : i32, i32
  }
  func.func @transform_3(%arg0: i32) -> (i32, i32) {
    %c0_i32 = arith.constant 0 : i32
    %c0_i32_0 = arith.constant 0 : i32
    %c0_i32_1 = arith.constant 0 : i32
    return %c0_i32, %c0_i32_0 : i32, i32
  }
  func.func @transform_4(%arg0: i32) -> (i32, i32) {
    %c0_i32 = arith.constant 0 : i32
    %c0_i32_0 = arith.constant 0 : i32
    %c0_i32_1 = arith.constant 0 : i32
    return %c0_i32, %c0_i32_0 : i32, i32
  }
  func.func @transform_5(%arg0: i32) -> (i32, i32, i32) {
    %c0_i32 = arith.constant 0 : i32
    %c0_i32_0 = arith.constant 0 : i32
    %c0_i32_1 = arith.constant 0 : i32
    return %arg0, %c0_i32, %c0_i32_0 : i32, i32, i32
  }
}

</mosaic_0001>

<bundles_post_ra>
// kernel: tnn_bin_conv2d.1
= control target key start
LH: loop header
LB: loop body
LE: loop exit
PB: predicated region body
PF: predicated region fallthrough
CT: control target
= control target key end

     0   :  { %s986_s18 = smov 0   ;;  %s1140_s0 = inlined_call_operand.vmem [shape: bf16[2,4,256], index: 0, kind: input, shape index: {}]   ;;  %s1141_s1 = inlined_call_operand.vmem [shape: bf16[8,36], index: 1, kind: input, shape index: {}]   ;;  %s1142_s2 = inlined_call_operand.vmem [shape: bf16[9,256], index: 2, kind: input, shape index: {}]   ;;  %s1143_s3 = inlined_call_operand.vmem [shape: f32[8,1], index: 3, kind: input, shape index: {}]   ;;  %s1144_s4 = inlined_call_operand.vmem [shape: f32[8,1], index: 4, kind: input, shape index: {}]   ;;  %s1145_s5 = inlined_call_operand.vmem [shape: f32[2,8,256], index: 5, kind: output, shape index: {}]  }
   0x1 LB: > { %s885_s19 = sadd.s32 4294967295, %s945_s18   ;;  %p889_p0 = scmp.ge.s32.totalorder %s945_s18, 1  ;;  %s945_s18 = sphi %s986_s18, %s15_s18  }
   0x2   : > { %p187_p1 = scmp.lt.s32.totalorder %s945_s18, 3 }
   0x4   : > { %p188_p2 = pnand %p889_p0, %p187_p1 }
   0x5   : > { %s947_s9 = smov (!%p188_p2), 111   ;;  %s948_s10 = smov (!%p188_p2), 113  }
   0x6   : > { %191 = sbr.rel (%p188_p2) target bundleno = 501 (0x1f5), region = 40  ;;  %s949_s13 = smov (!%p188_p2), 112  }
   0x7   : > { %s950_s14 = smov (!%p188_p2), 127   ;;  %s951_s15 = smov (!%p188_p2), 1  }
   0x8   : > { %s952_s16 = smov (!%p188_p2), 16   ;;  %s953_s17 = smov (!%p188_p2), 17  }
   0x9   : > { %s954_s20 = smov (!%p188_p2), 15   ;;  %p215_p3 = scmp.lt.s32.totalorder (!%p188_p2), %s885_s19, 1 }
   0xb   : > { %v234_v0 = vld [vmem:[%s1142_s2] sm:$0x11]  ;;  %v356_v6 = vld [vmem:[%s1142_s2] sm:$0x22]  ;;  %vm255_vm0 = vcmask 1043456   ;;  %s1147_s19 = smov (!%p215_p3, %s885_s19), 1 }
   0xc   : > { %v294_v1 = vld [vmem:[%s1142_s2] sm:$0x11]  ;;  %v236_v2 = vunpack.c.l.b16 %v234_v0  ;;  %v237_v3 = vunpack.c.h.b16 %v234_v0  ;;  %v414_v7 = vld [vmem:[%s1142_s2] sm:$0x22]  ;;  %v358_v8 = vunpack.c.l.b16 %v356_v6  ;;  %v359_v9 = vunpack.c.h.b16 %v356_v6  ;;  %v628_v40 = vld [vmem:[%s1142_s2] sm:$0x88] }
   0xd   : > { %v296_v4 = vunpack.c.l.b16 %v294_v1  ;;  %v297_v5 = vunpack.c.h.b16 %v294_v1  ;;  %v416_v10 = vunpack.c.l.b16 %v414_v7  ;;  %v417_v11 = vunpack.c.h.b16 %v414_v7  ;;  %v508_v49 = vld [vmem:[%s1142_s2] sm:$0x44]  ;;  %v690_v58 = vld [vmem:[%s1142_s2 + $0x8] sm:$0x11]  ;;  %s914_s21 = sshll.u32 %s1147_s19, 2  ;;  %s915_s8 = sshll.u32 %s1147_s19, 4 }
   0xe   : > { %v238_v12 = vpack.c.b16 %v236_v2, %v236_v2  ;;  %v239_v13 = vpack.c.b16 %v237_v3, %v237_v3  ;;  %v360_v16 = vpack.c.b16 %v358_v8, %v358_v8  ;;  %v361_v17 = vpack.c.b16 %v359_v9, %v359_v9  ;;  %v570_v3 = vld [vmem:[%s1142_s2] sm:$0x88]  ;;  %s219_s24 = scalar_lea.vmem %s1140_s0, %s914_s21  ;;  %s224_s11 = scalar_lea.vmem %s1145_s5, %s915_s8 }
   0xf   : > { %v298_v14 = vpack.c.b16 %v296_v4, %v296_v4  ;;  %v299_v15 = vpack.c.b16 %v297_v5, %v297_v5  ;;  %v418_v18 = vpack.c.b16 %v416_v10, %v416_v10  ;;  %v419_v19 = vpack.c.b16 %v417_v11, %v417_v11 }
  0x10   : > { %v241_v20 = vpack.i.b16 %v238_v12, %v238_v12  ;;  %v245_v21 = vpack.i.b16 %v239_v13, %v239_v13  ;;  %v363_v24 = vpack.i.b16 %v360_v16, %v360_v16  ;;  %v367_v25 = vpack.i.b16 %v361_v17, %v361_v17 }
  0x11   : > { %v301_v22 = vshrl.u32 %v298_v14, 16  ;;  %v306_v23 = vshrl.u32 %v299_v15, 16  ;;  %v421_v26 = vshrl.u32 %v418_v18, 16  ;;  %v426_v27 = vshrl.u32 %v419_v19, 16 }
  0x12   : > { %v243_v28 = vperm.slane %v241_v20, 0  ;;  %v247_v29 = vperm.slane %v245_v21, 0  ;;  %v365_v32 = vperm.slane %v363_v24, 1  ;;  %v369_v33 = vperm.slane %v367_v25, 1 }
  0x13   : > { %v302_v30 = vpack.i.b16 %v301_v22, %v301_v22  ;;  %v307_v31 = vpack.i.b16 %v306_v23, %v306_v23  ;;  %v422_v34 = vpack.i.b16 %v421_v26, %v421_v26  ;;  %v427_v35 = vpack.i.b16 %v426_v27, %v426_v27 }
  0x14   : > { %v250_v36 = vunpack.c.l.bf16 %v243_v28  ;;  %v251_v37 = vunpack.c.l.bf16 %v247_v29  ;;  %v372_v41 = vunpack.c.l.bf16 %v365_v32  ;;  %v373_v42 = vunpack.c.l.bf16 %v369_v33 }
  0x15   : > { %v304_v38 = vperm.slane %v302_v30, 0  ;;  %v309_v39 = vperm.slane %v307_v31, 0  ;;  %v424_v43 = vperm.slane %v422_v34, 1  ;;  %v429_v44 = vperm.slane %v427_v35, 1 }
  0x16   : > { %v254_v45 = vrot.slane %v251_v37, 4  ;;  %v630_v48 = vunpack.c.l.b16 %v628_v40  ;;  %v376_v50 = vrot.slane %v373_v42, 4  ;;  %v631_v53 = vunpack.c.h.b16 %v628_v40 }
  0x17   : > { %v312_v46 = vunpack.c.l.bf16 %v304_v38  ;;  %v313_v47 = vunpack.c.l.bf16 %v309_v39  ;;  %v432_v51 = vunpack.c.l.bf16 %v424_v43  ;;  %v433_v52 = vunpack.c.l.bf16 %v429_v44 }
  0x18   : > { %v256_v54 = vsel %vm255_vm0, %v250_v36, %v254_v45  ;;  %v632_v56 = vpack.c.b16 %v630_v48, %v630_v48  ;;  %v510_v57 = vunpack.c.l.b16 %v508_v49  ;;  %v377_v59 = vsel %vm255_vm0, %v372_v41, %v376_v50  ;;  %v228_v48 = vld [vmem:[%s219_s24] sm:$0xf] }
  0x19   : > { %v316_v55 = vrot.slane %v313_v47, 4  ;;  %257 = vrot.lane.b32.xlu0 %v256_v54, %s947_s9  ;;  %v436_v60 = vrot.slane %v433_v52, 4  ;;  %v633_v61 = vpack.c.b16 %v631_v53, %v631_v53  ;;  %v511_v62 = vunpack.c.h.b16 %v508_v49  ;;  %378 = vrot.lane.b32.xlu1 %v377_v59, %s948_s10  ;;  %229 = vst [vmem:[#allocation2 + $0x2] sm:$0xf] %v228_v48 }
  0x1a   : > { %v635_v0 = vshrl.u32 %v632_v56, 16  ;;  %v512_v1 = vpack.c.b16 %v510_v57, %v510_v57  ;;  %v692_v2 = vunpack.c.l.b16 %v690_v58  ;;  %v693_v7 = vunpack.c.h.b16 %v690_v58  ;;  %v476_v57 = vld [vmem:[%s1142_s2] sm:$0x44] }
  0x1b   : > { %v317_v63 = vsel %vm255_vm0, %v312_v46, %v316_v55  ;;  %v437_v4 = vsel %vm255_vm0, %v432_v51, %v436_v60  ;;  %v640_v5 = vshrl.u32 %v633_v61, 16  ;;  %v513_v6 = vpack.c.b16 %v511_v62, %v511_v62 }
  0x1c   : > { %v636_v8 = vpack.i.b16 %v635_v0, %v635_v0  ;;  %v515_v9 = vshrl.u32 %v512_v1, 16  ;;  %v694_v10 = vpack.c.b16 %v692_v2, %v692_v2  ;;  %v572_v11 = vunpack.c.l.b16 %v570_v3 }
  0x1d   : > { %v641_v12 = vpack.i.b16 %v640_v5, %v640_v5  ;;  %v520_v13 = vshrl.u32 %v513_v6, 16  ;;  %v695_v14 = vpack.c.b16 %v693_v7, %v693_v7  ;;  %v573_v15 = vunpack.c.h.b16 %v570_v3 }
  0x1e   : > { %v638_v16 = vperm.slane %v636_v8, 3  ;;  %v516_v17 = vpack.i.b16 %v515_v9, %v515_v9  ;;  %v697_v18 = vpack.i.b16 %v694_v10, %v694_v10  ;;  %v574_v19 = vpack.c.b16 %v572_v11, %v572_v11 }
  0x1f   : > { %v643_v20 = vperm.slane %v641_v12, 3  ;;  %v521_v21 = vpack.i.b16 %v520_v13, %v520_v13  ;;  %v701_v22 = vpack.i.b16 %v695_v14, %v695_v14  ;;  %v575_v23 = vpack.c.b16 %v573_v15, %v573_v15 }
  0x20   : > { %v518_v24 = vperm.slane %v516_v17, 2  ;;  %v699_v25 = vperm.slane %v697_v18, 0  ;;  %v577_v26 = vpack.i.b16 %v574_v19, %v574_v19  ;;  %v646_v31 = vunpack.c.l.bf16 %v638_v16 }
  0x21   : > { %318 = vrot.lane.b32.xlu0 %v317_v63, %s949_s13  ;;  %v647_v27 = vunpack.c.l.bf16 %v643_v20  ;;  %v523_v28 = vperm.slane %v521_v21, 2  ;;  %v703_v29 = vperm.slane %v701_v22, 0  ;;  %v581_v30 = vpack.i.b16 %v575_v23, %v575_v23  ;;  %438 = vrot.lane.b32.xlu1 %v437_v4, %s950_s14 }
  0x22   : > { %v526_v32 = vunpack.c.l.bf16 %v518_v24  ;;  %v706_v33 = vunpack.c.l.bf16 %v699_v25  ;;  %v579_v40 = vperm.slane %v577_v26, 3  ;;  %v955_v49 = vmov 0  }
  0x23   : > { %v650_v34 = vrot.slane %v647_v27, 4  ;;  %v527_v35 = vunpack.c.l.bf16 %v523_v28  ;;  %v707_v36 = vunpack.c.l.bf16 %v703_v29  ;;  %v583_v37 = vperm.slane %v581_v30, 3  ;;  %226 = vst [vmem:[#allocation2] sm:$0x3] %v955_v49  ;;  %937 = vset.pattern.permute.xlu0 %v955_v49  ;;  %938 = vset.pattern.permute.xlu1 %v955_v49 }
  0x24   : > { %v586_v45 = vunpack.c.l.bf16 %v579_v40  ;;  %227 = vst [vmem:[#allocation2 + $0x6] sm:$0x3] %v955_v49  ;;  %vm260_vm1 = vcmask 908288   ;;  %v479_v60 = vunpack.c.h.b16 %v476_v57  ;;  %vm321_vm2 = vcmask 916480  }
  0x25   : > { %v530_v38 = vrot.slane %v527_v35, 4  ;;  %v710_v39 = vrot.slane %v707_v36, 4  ;;  %v587_v41 = vunpack.c.l.bf16 %v583_v37  ;;  %v651_v42 = vsel %vm255_vm0, %v646_v31, %v650_v34  ;;  %v475_v37 = vld [vmem:[#allocation2 + $0x2] sm:$0xf] }
  0x26   : > { %v478_v2 = vunpack.c.l.b16 %v476_v57  ;;  %v481_v3 = vpack.c.b16 %v479_v60, %v479_v60  ;;  %vm381_vm3 = vcmask 924672   ;;  %vm441_vm4 = vcmask 1039360  }
  0x27   : > { %v531_v43 = vsel %vm255_vm0, %v526_v32, %v530_v38  ;;  %v711_v44 = vsel %vm255_vm0, %v706_v33, %v710_v39  ;;  %v590_v46 = vrot.slane %v587_v41, 4  ;;  %vm471_vm5 = vcmask 7168  }
  0x28   : > { %532 = vrot.lane.b32.xlu2 %v531_v43, %s951_s15  ;;  %v480_v14 = vpack.c.b16 %v478_v2, %v478_v2  ;;  %v487_v15 = vpack.i.b16 %v481_v3, %v481_v3  ;;  %v490_v43 = vunpack.c.l.bf16 %v475_v37  ;;  %vm409_vm6 = vcmask 121856  }
  0x29   : > { %652 = vrot.lane.b32.xlu0 %v651_v42, %s952_s16  ;;  %712 = vrot.lane.b32.xlu1 %v711_v44, %s953_s17  ;;  %v591_v47 = vsel %vm255_vm0, %v586_v45, %v590_v46  ;;  %vm351_vm7 = vcmask 130048   ;;  %vm289_vm8 = vcmask 138240   ;;  %vm781_vm9 = vcmask 1041408  }
  0x2a   : > { %v233_v50 = vld [vmem:[#allocation2] sm:$0x3f]  ;;  %v483_v20 = vpack.i.b16 %v480_v14, %v480_v14  ;;  %v489_v21 = vperm.slane %v487_v15, 2  ;;  %vm777_vm10 = vcmask 293888  }
  0x2b   : > { %v249_v51 = vunpack.c.h.bf16 %v233_v50  ;;  %v248_v53 = vunpack.c.l.bf16 %v233_v50  ;;  %v293_v59 = vld [vmem:[#allocation2] sm:$0x3f] }
  0x2c   : > { %v311_v61 = vunpack.c.h.bf16 %v293_v59  ;;  %v310_v0 = vunpack.c.l.bf16 %v293_v59  ;;  %v355_v8 = vld [vmem:[#allocation2] sm:$0x3f]  ;;  %v485_v29 = vperm.slane %v483_v20, 2  ;;  %v492_v30 = vunpack.c.l.bf16 %v489_v21 }
  0x2d   : > { %v371_v16 = vunpack.c.h.bf16 %v355_v8  ;;  %v370_v17 = vunpack.c.l.bf16 %v355_v8  ;;  %v413_v24 = vld [vmem:[#allocation2] sm:$0x3f] }
  0x2e   : > { %v431_v31 = vunpack.c.h.bf16 %v413_v24  ;;  %v430_v32 = vunpack.c.l.bf16 %v413_v24  ;;  %v491_v35 = vunpack.c.l.bf16 %v485_v29  ;;  %v495_v36 = vrot.slane %v492_v30, 4  ;;  %v507_v40 = vld [vmem:[#allocation2 + $0x2] sm:$0x3f] }
  0x2f   : > { %v525_v46 = vunpack.c.h.bf16 %v507_v40  ;;  %v524_v57 = vunpack.c.l.bf16 %v507_v40 }
  0x30   : > { %592 = vrot.lane.b32.xlu2 %v591_v47, %s954_s20  ;;  %v496_v45 = vsel %vm255_vm0, %v491_v35, %v495_v36 }
  0x31   : > { %v498_v48 = vmul.f32 %v496_v45, %v490_v43 }
  0x82   : > { %v533_v34 = vpop.permute.xlu2 %532 }
  0x83   : > { %v534_v47 = vrot.slane %v533_v34, 4 }
  0x85   : > { %v540_v49 = vmul.f32 %v534_v47, %v525_v46 }
  0x8a   : > { %v593_v50 = vpop.permute.xlu2 %592 }
  0x8b   : > { %v258_v52 = vpop.permute.xlu0 %257  ;;  %v379_v62 = vpop.permute.xlu1 %378 }
  0x8c   : > { %v259_v54 = vrot.slane %v258_v52, 4  ;;  %v380_v9 = vrot.slane %v379_v62, 4 }
  0x8e   : > { %v261_v55 = vsel %vm260_vm1, %v259_v54, %v258_v52  ;;  %v265_v56 = vmul.f32 %v259_v54, %v249_v51  ;;  %v382_v18 = vsel %vm381_vm3, %v380_v9, %v379_v62  ;;  %v386_v22 = vmul.f32 %v380_v9, %v371_v16  ;;  %v569_v51 = vld [vmem:[#allocation2 + $0x2] sm:$0x3f] }
  0x8f   : > { %v264_v58 = vmul.f32 %v261_v55, %v248_v53  ;;  %v385_v23 = vmul.f32 %v382_v18, %v370_v17  ;;  %v585_v55 = vunpack.c.h.bf16 %v569_v51 }
  0x90   : > { %270 = vst [vmem:[#allocation1 + $0x10] ss:$2 sm:$0xff] %v265_v56  ;;  %v594_v56 = vrot.slane %v593_v50, 4 }
  0x91   : > { %268 = vst [vmem:[#allocation1] ss:$2 sm:$0xff] %v264_v58  ;;  %v536_v58 = vsel %vm471_vm5, %v534_v47, %v533_v34 }
  0x92   : > { %v600_v59 = vmul.f32 %v594_v56, %v585_v55  ;;  %v539_v60 = vmul.f32 %v536_v58, %v524_v57 }
  0x93   : > { %v319_v63 = vpop.permute.xlu0 %318  ;;  %v439_v19 = vpop.permute.xlu1 %438 }
  0x94   : > { %v320_v1 = vrot.slane %v319_v63, 4  ;;  %v440_v25 = vrot.slane %v439_v19, 4 }
  0x96   : > { %v322_v4 = vsel %vm321_vm2, %v320_v1, %v319_v63  ;;  %v326_v5 = vmul.f32 %v320_v1, %v311_v61  ;;  %v442_v33 = vsel %vm441_vm4, %v440_v25, %v439_v19  ;;  %v446_v38 = vmul.f32 %v440_v25, %v431_v31  ;;  %v627_v61 = vld [vmem:[#allocation2 + $0x2] sm:$0x3f] }
  0x97   : > { %v273_v6 = vld.sshfl [vmem:[#allocation1 + $0x10] sm:$0xff pattern:$0x75316420]  ;;  %v325_v7 = vmul.f32 %v322_v4, %v310_v0  ;;  %v445_v39 = vmul.f32 %v442_v33, %v430_v32  ;;  %v645_v2 = vunpack.c.h.bf16 %v627_v61  ;;  %v584_v4 = vunpack.c.l.bf16 %v569_v51 }
  0x98   : > { %v271_v10 = vld.sshfl [vmem:[#allocation1] sm:$0xff pattern:$0x75316420]  ;;  %v272_v11 = vld.sshfl [vmem:[#allocation1 + $0x8] sm:$0xff pattern:$0x75316420]  ;;  %v278_v12 = vpack.c.bf16 %v273_v6, %v273_v6  ;;  %v644_v17 = vunpack.c.l.bf16 %v627_v61 }
  0x99   : > { %329 = vst [vmem:[#allocation1] ss:$2 sm:$0xff] %v325_v7  ;;  %v277_v13 = vpack.c.bf16 %v272_v11, %v271_v10  ;;  %v689_v10 = vld [vmem:[#allocation2 + $0x2] sm:$0x3f] }
  0x9a   : > { %331 = vst [vmem:[#allocation1 + $0x10] ss:$2 sm:$0xff] %v326_v5  ;;  %283 = vrot.lane.b32.xlu2 %v278_v12, %s953_s17  ;;  %v596_v5 = vsel %vm409_vm6, %v594_v56, %v593_v50  ;;  %v705_v16 = vunpack.c.h.bf16 %v689_v10  ;;  %v704_v25 = vunpack.c.l.bf16 %v689_v10 }
  0x9b   : > { %281 = vrot.lane.b32.xlu1 %v277_v13, %s953_s17  ;;  %v653_v1 = vpop.permute.xlu0 %652  ;;  %v599_v9 = vmul.f32 %v596_v5, %v584_v4  ;;  %v713_v14 = vpop.permute.xlu1 %712 }
  0x9c   : > { %v654_v6 = vrot.slane %v653_v1, 4  ;;  %v714_v19 = vrot.slane %v713_v14, 4 }
  0x9e   : > { %v660_v8 = vmul.f32 %v654_v6, %v645_v2  ;;  %v656_v18 = vsel %vm351_vm7, %v654_v6, %v653_v1  ;;  %v720_v20 = vmul.f32 %v714_v19, %v705_v16  ;;  %v716_v31 = vsel %vm289_vm8, %v714_v19, %v713_v14 }
  0x9f   : > { %v719_v34 = vmul.f32 %v716_v31, %v704_v25 }
  0xa0   : > { %v1052_v26 = vld.sshfl [vmem:[#allocation1] sm:$0xff pattern:$0x75316420]  ;;  %v1054_v27 = vld.sshfl [vmem:[#allocation1 + $0x8] sm:$0xff pattern:$0x75316420] }
  0xa1   : > { %v1056_v28 = vld.sshfl [vmem:[#allocation1 + $0x10] sm:$0xff pattern:$0x75316420]  ;;  %389 = vst [vmem:[#allocation1] ss:$2 sm:$0xff] %v385_v23  ;;  %v338_v51 = vpack.c.bf16 %v1054_v27, %v1052_v26 }
  0xa2   : > { %391 = vst [vmem:[#allocation1 + $0x10] ss:$2 sm:$0xff] %v386_v22  ;;  %v659_v22 = vmul.f32 %v656_v18, %v644_v17  ;;  %v339_v35 = vpack.c.bf16 %v1056_v28, %v1056_v28 }
  0xa3   : > { %v342_v55 = vrot.slane %v338_v51, 6 }
  0xa4   : > { %v343_v40 = vrot.slane %v339_v35, 6 }
  0xa8   : > { %v1059_v41 = vld.sshfl [vmem:[#allocation1] sm:$0xff pattern:$0x75316420]  ;;  %v1061_v42 = vld.sshfl [vmem:[#allocation1 + $0x8] sm:$0xff pattern:$0x75316420] }
  0xa9   : > { %v1063_v44 = vld.sshfl [vmem:[#allocation1 + $0x10] sm:$0xff pattern:$0x75316420]  ;;  %449 = vst [vmem:[#allocation1] ss:$2 sm:$0xff] %v445_v39 }
  0xaa   : > { %451 = vst [vmem:[#allocation1 + $0x10] ss:$2 sm:$0xff] %v446_v38  ;;  %v399_v56 = vpack.c.bf16 %v1063_v44, %v1063_v44 }
  0xb0   : > { %v1066_v52 = vld.sshfl [vmem:[#allocation1] sm:$0xff pattern:$0x75316420]  ;;  %v1068_v53 = vld.sshfl [vmem:[#allocation1 + $0x8] sm:$0xff pattern:$0x75316420] }
  0xb1   : > { %500 = vst [vmem:[#allocation1] ss:$2 sm:$0xff] %v498_v48  ;;  %v1070_v54 = vld.sshfl [vmem:[#allocation1 + $0x10] sm:$0xff pattern:$0x75316420]  ;;  %v458_v46 = vpack.c.bf16 %v1068_v53, %v1066_v52  ;;  %v398_v52 = vpack.c.bf16 %v1061_v42, %v1059_v41 }
  0xb2   : > { %545 = vst [vmem:[#allocation1 + $0x10] ss:$2 sm:$0xff] %v540_v49  ;;  %v459_v53 = vpack.c.bf16 %v1070_v54, %v1070_v54 }
  0xb3   : > { %v462_v49 = vrot.slane %v458_v46, 6 }
  0xb4   : > { %v463_v57 = vrot.slane %v459_v53, 6 }
  0xb8   : > { %v1073_v62 = vld.sshfl [vmem:[#allocation1] sm:$0xff pattern:$0x75316420]  ;;  %v1075_v63 = vld.sshfl [vmem:[#allocation1 + $0x8] sm:$0xff pattern:$0x75316420] }
  0xb9   : > { %v548_v0 = vld.sshfl [vmem:[#allocation1 + $0x10] sm:$0xff pattern:$0x75316420]  ;;  %543 = vst [vmem:[#allocation1] ss:$2 sm:$0xff] %v539_v60  ;;  %v505_v42 = vpack.c.bf16 %v1075_v63, %v1073_v62 }
  0xba   : > { %605 = vst [vmem:[#allocation1 + $0x10] ss:$2 sm:$0xff] %v600_v59  ;;  %v553_v3 = vpack.c.bf16 %v548_v0, %v548_v0 }
  0xbb   : > { %506 = vst [vmem:[#allocation3 + $0x10] sm:$0x33] %v505_v42  ;;  %v230_v42 = vld [vmem:[%s1141_s1] sm:$0xf] }
  0xbc   : > { %v557_v7 = vrot.slane %v553_v3, 6 }
  0xbe   : > { %560 = vrot.lane.b32.xlu2 %v557_v7, %s950_s14 }
  0xc0   : > { %v546_v11 = vld.sshfl [vmem:[#allocation1] sm:$0xff pattern:$0x75316420]  ;;  %v547_v12 = vld.sshfl [vmem:[#allocation1 + $0x8] sm:$0xff pattern:$0x75316420] }
  0xc1   : > { %v608_v13 = vld.sshfl [vmem:[#allocation1 + $0x10] sm:$0xff pattern:$0x75316420]  ;;  %603 = vst [vmem:[#allocation1] ss:$2 sm:$0xff] %v599_v9  ;;  %v552_v21 = vpack.c.bf16 %v547_v12, %v546_v11 }
  0xc2   : > { %v613_v15 = vpack.c.bf16 %v608_v13, %v608_v13  ;;  %665 = vst [vmem:[#allocation1 + $0x10] ss:$2 sm:$0xff] %v660_v8 }
  0xc3   : > { %v556_v32 = vrot.slane %v552_v21, 6 }
  0xc4   : > { %618 = vrot.lane.b32.xlu1 %v613_v15, %s948_s10 }
  0xc8   : > { %v606_v23 = vld.sshfl [vmem:[#allocation1] sm:$0xff pattern:$0x75316420]  ;;  %v607_v24 = vld.sshfl [vmem:[#allocation1 + $0x8] sm:$0xff pattern:$0x75316420] }
  0xc9   : > { %v612_v29 = vpack.c.bf16 %v607_v24, %v606_v23  ;;  %663 = vst [vmem:[#allocation1] ss:$2 sm:$0xff] %v659_v22  ;;  %v668_v30 = vld.sshfl [vmem:[#allocation1 + $0x10] sm:$0xff pattern:$0x75316420]  ;;  %v231_v23 = vld [vmem:[%s1143_s3] sm:$0xff] }
  0xca   : > { %725 = vst [vmem:[#allocation1 + $0x10] ss:$2 sm:$0xff] %v720_v20  ;;  %v673_v33 = vpack.c.bf16 %v668_v30, %v668_v30  ;;  %v232_v24 = vld [vmem:[%s1144_s4] sm:$0xff] }
  0xcb   : > { %616 = vrot.lane.b32.xlu0 %v612_v29, %s948_s10 }
  0xcc   : > { %558 = vrot.lane.b32.xlu1 %v556_v32, %s950_s14  ;;  %v677_v36 = vrot.slane %v673_v33, 6 }
  0xd0   : > { %v666_v37 = vld.sshfl [vmem:[#allocation1] sm:$0xff pattern:$0x75316420]  ;;  %v667_v38 = vld.sshfl [vmem:[#allocation1 + $0x8] sm:$0xff pattern:$0x75316420] }
  0xd1   : > { %v672_v39 = vpack.c.bf16 %v667_v38, %v666_v37  ;;  %723 = vst [vmem:[#allocation1] ss:$2 sm:$0xff] %v719_v34  ;;  %v728_v45 = vld.sshfl [vmem:[#allocation1 + $0x10] sm:$0xff pattern:$0x75316420] }
  0xd2   : > { %v733_v47 = vpack.c.bf16 %v728_v45, %v728_v45 }
  0xd3   : > { %680 = vrot.lane.b32.xlu0 %v677_v36, %s949_s13  ;;  %v676_v43 = vrot.slane %v672_v39, 6 }
  0xd4   : > { %346 = vrot.lane.b32.xlu1 %v343_v40, %s952_s16 }
  0xd5   : > { %678 = vrot.lane.b32.xlu2 %v676_v43, %s949_s13 }
  0xd8   : > { %v726_v48 = vld.sshfl [vmem:[#allocation1] sm:$0xff pattern:$0x75316420]  ;;  %v727_v28 = vld.sshfl [vmem:[#allocation1 + $0x8] sm:$0xff pattern:$0x75316420] }
  0xd9   : > { %v732_v50 = vpack.c.bf16 %v727_v28, %v726_v48 }
  0xdb   : > { %738 = vrot.lane.b32.xlu0 %v733_v47, %s947_s9 }
  0xdc   : > { %464 = vrot.lane.b32.xlu1 %v462_v49, %s951_s15 }
  0xdd   : > { %736 = vrot.lane.b32.xlu2 %v732_v50, %s947_s9 }
  0xe3   : > { %344 = vrot.lane.b32.xlu0 %v342_v55, %s952_s16 }
  0xe4   : > { %823 = vperm.xlu1 %938, %v232_v24  }
  0xe5   : > { %402 = vrot.lane.b32.xlu2 %v398_v52, %s954_s20 }
  0xeb   : > { %404 = vrot.lane.b32.xlu0 %v399_v56, %s954_s20 }
  0xed   : > { %466 = vrot.lane.b32.xlu2 %v463_v57, %s951_s15 }
  0xf3   : > { %816 = vperm.xlu0 %937, %v231_v23  }
  0xf4   : > { %v284_v26 = vpop.permute.xlu2 %283 }
  0xf5   : > { %v286_v58 = vrot.slane %v284_v26, 4 }
 0x10d   : > { %v282_v27 = vpop.permute.xlu1 %281 }
 0x10e   : > { %v285_v59 = vrot.slane %v282_v27, 4 }
 0x110   : > { %v288_v60 = vsel %vm255_vm0, %v285_v59, %v286_v58 }
 0x111   : > { %v290_v41 = vsel %vm289_vm8, %v282_v27, %v288_v60 }
 0x112   : > { %292 = vst [vmem:[#allocation3] sm:$0x33] %v290_v41 }
 0x118   : > { %v561_v54 = vpop.permute.xlu2 %560 }
 0x119   : > { %v563_v5 = vrot.slane %v561_v54, 4 }
 0x12f   : > { %v679_v44 = vpop.permute.xlu2 %678 }
 0x130   : > { %v682_v11 = vrot.slane %v679_v44, 4 }
 0x136   : > { %v619_v61 = vpop.permute.xlu1 %618 }
 0x137   : > { %v737_v0 = vpop.permute.xlu2 %736  ;;  %v621_v2 = vrot.slane %v619_v61, 4 }
 0x138   : > { %v740_v18 = vrot.slane %v737_v0, 4 }
 0x13d   : > { %v617_v1 = vpop.permute.xlu0 %616 }
 0x13e   : > { %v559_v3 = vpop.permute.xlu1 %558  ;;  %v620_v4 = vrot.slane %v617_v1, 4 }
 0x13f   : > { %v562_v6 = vrot.slane %v559_v3, 4  ;;  %v403_v62 = vpop.permute.xlu2 %402 }
 0x140   : > { %v622_v7 = vsel %vm255_vm0, %v620_v4, %v621_v2  ;;  %v406_v47 = vrot.slane %v403_v62, 4 }
 0x141   : > { %v564_v8 = vsel %vm255_vm0, %v562_v6, %v563_v5  ;;  %v624_v9 = vsel %vm381_vm3, %v617_v1, %v622_v7 }
 0x142   : > { %v566_v10 = vsel %vm441_vm4, %v559_v3, %v564_v8  ;;  %626 = vst [vmem:[#allocation3 + $0x18] sm:$0x33] %v624_v9 }
 0x143   : > { %568 = vst [vmem:[#allocation3 + $0x10] sm:$0xcc] %v566_v10 }
 0x145   : > { %v681_v63 = vpop.permute.xlu0 %680 }
 0x146   : > { %v347_v12 = vpop.permute.xlu1 %346  ;;  %v683_v13 = vrot.slane %v681_v63, 4 }
 0x147   : > { %v467_v16 = vpop.permute.xlu2 %466  ;;  %v349_v33 = vrot.slane %v347_v12, 4 }
 0x148   : > { %v684_v14 = vsel %vm255_vm0, %v682_v11, %v683_v13  ;;  %v469_v21 = vrot.slane %v467_v16, 4 }
 0x149   : > { %v686_v15 = vsel %vm321_vm2, %v679_v44, %v684_v14 }
 0x14a   : > { %688 = vst [vmem:[#allocation3 + $0x18] sm:$0xcc] %v686_v15  ;;  %v904_v55 = vld [vmem:[#allocation3 + $0x10] sm:$0xf]  ;;  %v918_v52 = vld [vmem:[#allocation3 + $0x14] sm:$0xf] }
 0x14d   : > { %v739_v17 = vpop.permute.xlu0 %738 }
 0x14e   : > { %v465_v19 = vpop.permute.xlu1 %464  ;;  %v741_v20 = vrot.slane %v739_v17, 4 }
 0x14f   : > { %v468_v22 = vrot.slane %v465_v19, 4 }
 0x150   : > { %v742_v25 = vsel %vm255_vm0, %v740_v18, %v741_v20 }
 0x151   : > { %v470_v29 = vsel %vm255_vm0, %v468_v22, %v469_v21  ;;  %v744_v30 = vsel %vm260_vm1, %v737_v0, %v742_v25  ;;  %v919_v46 = vld [vmem:[#allocation3 + $0x14] sm:$0xf0]  ;;  %v906_v50 = vld [vmem:[#allocation3 + $0x18] sm:$0xf0] }
 0x152   : > { %v472_v31 = vsel %vm471_vm5, %v465_v19, %v470_v29  ;;  %746 = vst [vmem:[#allocation3 + $0x20] sm:$0x33] %v744_v30  ;;  %v905_v56 = vor.u32 %v919_v46, %v904_v55  ;;  %v909_v57 = vor.u32 %v918_v52, %v906_v50 }
 0x153   : > { %474 = vst [vmem:[#allocation3 + $0x8] sm:$0xcc] %v472_v31 }
 0x155   : > { %v345_v32 = vpop.permute.xlu0 %344 }
 0x156   : > { %v348_v34 = vrot.slane %v345_v32, 4  ;;  %v824_v44 = vpop.permute.xlu1 %823 }
 0x158   : > { %v350_v35 = vsel %vm255_vm0, %v348_v34, %v349_v33 }
 0x159   : > { %v352_v36 = vsel %vm351_vm7, %v345_v32, %v350_v35  ;;  %v751_v37 = vld [vmem:[#allocation3 + $0x20] sm:$0x33] }
 0x15a   : > { %354 = vst [vmem:[#allocation3] sm:$0xcc] %v352_v36  ;;  %v765_v38 = vunpack.c.l.b16 %v751_v37  ;;  %v766_v39 = vunpack.c.h.b16 %v751_v37 }
 0x15c   : > { %v771_v40 = vpack.c.b16 %v765_v38, %v765_v38  ;;  %v772_v43 = vpack.c.b16 %v766_v39, %v766_v39 }
 0x15d   : > { %v405_v45 = vpop.permute.xlu0 %404 }
 0x15e   : > { %v407_v48 = vrot.slane %v405_v45, 4  ;;  %v783_v28 = vsel %vm781_vm9, %v771_v40, 0  ;;  %v786_v49 = vsel %vm781_vm9, %v772_v43, 0 }
 0x15f   : > { %793 = vmatpush.bf16.msra.mxu0 %v783_v28  ;;  %806 = vmatpush.bf16.msra.mxu1 %v786_v49 }
 0x160   : > { %v408_v51 = vsel %vm255_vm0, %v406_v47, %v407_v48 }
 0x161   : > { %v410_v53 = vsel %vm409_vm6, %v403_v62, %v408_v51  ;;  %v896_v26 = vld [vmem:[#allocation3] sm:$0xf]  ;;  %v916_v58 = vld [vmem:[#allocation3 + $0x4] sm:$0xf] }
 0x162   : > { %412 = vst [vmem:[#allocation3 + $0x8] sm:$0x33] %v410_v53 }
 0x163   : > { %794 = vmatpush.bf16.msra.mxu0 %v905_v56  ;;  %807 = vmatpush.bf16.msra.mxu1 %v909_v57 }
 0x165   : > { %v817_v54 = vpop.permute.xlu0 %816 }
 0x169   : > { %v917_v27 = vld [vmem:[#allocation3 + $0x4] sm:$0xf0]  ;;  %v898_v59 = vld [vmem:[#allocation3 + $0x8] sm:$0xf0] }
 0x16a   : > { %v897_v60 = vor.u32 %v917_v27, %v896_v26  ;;  %v901_v41 = vor.u32 %v916_v58, %v898_v59 }
 0x16c   : > { %795 = vmatpush.bf16.msra.mxu0 %v897_v60  ;;  %808 = vmatpush.bf16.msra.mxu1 %v901_v41 }
 0x16f   : > { %910 = vmatmul.msk.bf16.vlgmr.msra.gmra.mxu0 %vm777_vm10, %v230_v42  ;;  %911 = vmatmul.msk.bf16.vlgmr.msra.gmra.mxu1 %vm777_vm10, %v230_v42 }
 0x1ec   : > { %v797_v61 = vpop.f32.mrf.mxu0  ;;  %v810_v0 = vpop.f32.mrf.mxu1 }
 0x1ed   : > { %v819_v1 = vmul.f32 %v817_v54, %v797_v61  ;;  %v820_v2 = vmul.f32 %v817_v54, %v810_v0 }
 0x1ef   : > { %v826_v3 = vadd.f32 %v824_v44, %v819_v1  ;;  %v827_v4 = vadd.f32 %v824_v44, %v820_v2 }
 0x1f1   : > { %828 = vst [vmem:[%s224_s11] sm:$0xff] %v826_v3 }
 0x1f2   : > { %829 = vst [vmem:[%s224_s11 + $0x8] sm:$0xff] %v827_v4 }
 0x1f4   : > { %v799_v5 = vpop.f32.mrf.mxu0  ;;  %v812_v6 = vpop.f32.mrf.mxu1 }
 0x1f5 PF: > { %s15_s18 = sadd.s32 1, %s945_s18  }
 0x1f6   : > { %p12_p4 = scmp.ge.s32.totalorder %s15_s18, 4  }
 0x1f8   :  { %14 = sbr.rel (!%p12_p4) target bundleno = 1 (0x1), region = 78 }

</bundles_post_ra>
